<compile_context>
chip_gen: v7x
topology: tpu7x:2x2x1
jax: 0.10.0
libtpu: 0.0.40
codegen_flags: <defaults>
</compile_context>

<pallas_src>
import functools
import math

import jax
import jax.numpy as jnp
from jax.experimental import pallas as pl
from jax.experimental.pallas import tpu as pltpu


def _round_up(x, m):
    return ((x + m - 1) // m) * m


# ---------------------------------------------------------------------------
# Pallas kernels.
# ---------------------------------------------------------------------------
def _gemm_bias_kernel_single(x_ref, w_ref, b_ref, o_ref):
    # Whole K fits one tile: no accumulator, no predicates.
    o_ref[...] = (jnp.dot(x_ref[...], w_ref[...],
                          preferred_element_type=jnp.float32)
                  + b_ref[...]).astype(o_ref.dtype)


def _gemm_bias_kernel_resident(x_ref, w_ref, b_ref, o_ref):
    # K-tiled GEMM accumulating directly into the resident f32 output block
    # (output index_map ignores k -> block stays in VMEM across the reduction).
    k = pl.program_id(1)
    partial = jnp.dot(x_ref[...], w_ref[...], preferred_element_type=jnp.float32)

    @pl.when(k == 0)
    def _():
        o_ref[...] = b_ref[...] + partial

    @pl.when(k > 0)
    def _():
        o_ref[...] += partial


def _gemm_bias_kernel_scratch(x_ref, w_ref, b_ref, o_ref, acc_ref):
    # K-tiled GEMM with f32 scratch accumulator; used for narrow output dtypes.
    k = pl.program_id(1)

    @pl.when(k == 0)
    def _():
        acc_ref[...] = jnp.zeros_like(acc_ref)

    acc_ref[...] += jnp.dot(x_ref[...], w_ref[...],
                            preferred_element_type=jnp.float32)

    @pl.when(k == pl.num_programs(1) - 1)
    def _():
        o_ref[...] = (acc_ref[...] + b_ref[...]).astype(o_ref.dtype)


# ---------------------------------------------------------------------------
# Tile selection (MXU-aligned, VMEM-aware).
# ---------------------------------------------------------------------------
def _select_tiles(N, K, Dp, in_isz, w_isz, out_isz):
    # --- K tiling: ~1024-wide, 256-aligned tiles that divide padded K exactly.
    Kp0 = _round_up(K, 128)
    nk = pl.cdiv(Kp0, 1024)
    tk_align = 256 if Kp0 >= 256 else 128
    tk = _round_up(pl.cdiv(Kp0, nk), tk_align)
    Kp = tk * nk

    # --- Row tiling: never force a split of small N; large MXU-aligned tiles
    # (up to 1024 rows) for big N so the weight is re-streamed fewer times.
    if N <= 1024:
        tm = max(8, _round_up(N, 8))
    else:
        tm = 1024

    # --- VMEM budget (double-buffered tiles + optional f32 scratch), capped at
    # 75% of physical VMEM (48 MiB on v7x, 96 MiB on v5e/v6e).
    try:
        cap = int(pltpu.get_tpu_info().vmem_capacity_bytes)
    except Exception:
        cap = 64 * 1024 * 1024  # conservative (v7x per-TC) fallback
    ceiling = (cap * 3) // 4

    def budget(tm_):
        scratch = tm_ * Dp * 4 if (nk > 1 and out_isz < 4) else 0
        return (2 * tm_ * tk * in_isz        # patch tile, double buffered
                + 2 * tk * Dp * w_isz        # weight K-tile, double buffered
                + 2 * tm_ * Dp * out_isz     # output tile, double buffered
                + 2 * Dp * 4                 # bias (f32), resident
                + scratch)

    while tm > 256 and (budget(tm) * 3) // 2 > ceiling:
        tm = _round_up(tm // 2, 256)

    vmem_limit = int(min(ceiling, max((budget(tm) * 3) // 2, 32 * 1024 * 1024)))
    return tm, tk, Kp, nk, vmem_limit


# ---------------------------------------------------------------------------
# GEMM + bias pallas_call wrapper.
# ---------------------------------------------------------------------------
def _patch_matmul(patches, w2d, bias2d, *, tm, tk, vmem_limit, out_dtype):
    """patches: (N, Kp), w2d: (Kp, Dp), bias2d: (1, Dp) f32 -> (N, Dp)."""
    N, Kp = patches.shape
    Dp = w2d.shape[1]
    assert Kp % tk == 0, "K tile must divide padded K exactly"
    nm = pl.cdiv(N, tm)
    nk = Kp // tk

    out_isz = jnp.dtype(out_dtype).itemsize
    cost = pl.CostEstimate(
        flops=int(2 * N * Kp * Dp),
        transcendentals=0,
        bytes_accessed=int(N * Kp * patches.dtype.itemsize
                           + nm * Kp * Dp * w2d.dtype.itemsize
                           + N * Dp * out_isz
                           + Dp * bias2d.dtype.itemsize),
    )
    out_shape = jax.ShapeDtypeStruct((N, Dp), out_dtype)

    if nk == 1:
        kernel = _gemm_bias_kernel_single
        semantics = ("parallel",)
        grid_spec = pltpu.PrefetchScalarGridSpec(
            num_scalar_prefetch=0,
            grid=(nm,),
            in_specs=[
                pl.BlockSpec((tm, tk), lambda i: (i, 0)),   # patch rows
                pl.BlockSpec((tk, Dp), lambda i: (0, 0)),   # full weight, resident
                pl.BlockSpec((1, Dp), lambda i: (0, 0)),    # bias, resident
            ],
            out_specs=pl.BlockSpec((tm, Dp), lambda i: (i, 0)),
        )
    else:
        semantics = ("parallel", "arbitrary")               # reduction axis last
        in_specs = [
            pl.BlockSpec((tm, tk), lambda i, k: (i, k)),    # patch rows x K tile
            pl.BlockSpec((tk, Dp), lambda i, k: (k, 0)),    # weight K tile
            pl.BlockSpec((1, Dp), lambda i, k: (0, 0)),     # bias, resident
        ]
        out_specs = pl.BlockSpec((tm, Dp), lambda i, k: (i, 0))
        if jnp.dtype(out_dtype) == jnp.dtype(jnp.float32):
            kernel = _gemm_bias_kernel_resident
            scratch = []
        else:
            kernel = _gemm_bias_kernel_scratch
            scratch = [pltpu.VMEM((tm, Dp), jnp.float32)]
        grid_spec = pltpu.PrefetchScalarGridSpec(
            num_scalar_prefetch=0,
            grid=(nm, nk),
            in_specs=in_specs,
            out_specs=out_specs,
            scratch_shapes=scratch,
        )

    return pl.pallas_call(
        kernel,
        out_shape=out_shape,
        grid_spec=grid_spec,
        compiler_params=pltpu.CompilerParams(
            dimension_semantics=semantics,
            vmem_limit_bytes=vmem_limit,
            # Let XLA fold the patch reshape/transpose producer into this call's
            # input pipeline where possible (avoids an extra HBM round trip).
            allow_input_fusion=[True, False, False],
        ),
        cost_estimate=cost,
    )(patches, w2d, bias2d)


# ---------------------------------------------------------------------------
# Module-equivalent wrapper.
# ---------------------------------------------------------------------------
def tmae_patching_forward(x, weight, bias, patch_size, compute_dtype=None):
    """Equivalent of TMAE_patching.forward.

    x:      (B, d_model, H, W)        -- NCHW, like PyTorch
    weight: (d_model, d_model, p, p)  -- Conv2d weight [out, in, kh, kw]
    bias:   (d_model,)
    compute_dtype: optional GEMM operand dtype (e.g. jnp.bfloat16 on v6e/v7x);
                   accumulation and bias epilogue are always f32.
    returns (B, (H//p)*(W//p), d_model)
    """
    B, C, H, W = x.shape
    p = patch_size
    D = weight.shape[0]
    assert H % p == 0 and W % p == 0 and weight.shape[1] == C
    Hp, Wp = H // p, W // p
    N = B * Hp * Wp
    K = p * p * C
    out_dtype = x.dtype

    # im2col with K ordered (kh, kw, C): the transpose's minor (lane) dim is the
    # channel dim C = d_model (lane-dense) instead of kw = p << 128.
    # TODO(synk): for very large activations, pull this gather into the kernel
    # via memory_space=pl.ANY + manual strided make_async_copy instead.
    xp = x.reshape(B, C, Hp, p, Wp, p)                 # (B, C, Hp, kh, Wp, kw)
    xp = jnp.transpose(xp, (0, 2, 4, 3, 5, 1))         # (B, Hp, Wp, kh, kw, C)
    patches = xp.reshape(N, K)                         # (N, K), k = (kh, kw, c)

    # Conv weight [out, in, kh, kw] -> (kh, kw, c, out) -> (K, D); tiny, cheap.
    w2d = jnp.transpose(weight, (2, 3, 1, 0)).reshape(K, D)
    b2d = bias.astype(jnp.float32).reshape(1, D)       # f32 bias epilogue

    if compute_dtype is not None:
        patches = patches.astype(compute_dtype)
        w2d = w2d.astype(compute_dtype)
    else:
        w2d = w2d.astype(patches.dtype)

    # Lane-pad the feature dim so output stores are lane-dense (x128).
    Dp = _round_up(D, 128)

    tm, tk, Kp, nk, vmem_limit = _select_tiles(
        N, K, Dp,
        in_isz=patches.dtype.itemsize,
        w_isz=w2d.dtype.itemsize,
        out_isz=jnp.dtype(out_dtype).itemsize,
    )

    # Zero padding along K is a mathematical no-op for the dot product.
    if Kp != K:
        patches = jnp.pad(patches, ((0, 0), (0, Kp - K)))
        w2d = jnp.pad(w2d, ((0, Kp - K), (0, 0)))
    if Dp != D:
        w2d = jnp.pad(w2d, ((0, 0), (0, Dp - D)))
        b2d = jnp.pad(b2d, ((0, 0), (0, Dp - D)))

    out = _patch_matmul(patches, w2d, b2d,
                        tm=tm, tk=tk, vmem_limit=vmem_limit,
                        out_dtype=out_dtype)            # (N, Dp)

    # No-op when d_model is already a multiple of 128 (Dp == D).
    if Dp != D:
        out = out[:, :D]

    # conv output (B, D, Hp, Wp) rearranged 'B D H W -> B (H W) D'.
    return out.reshape(B, Hp * Wp, D)


# ---------------------------------------------------------------------------
# Reference (pure JAX conv) for correctness checking.
# ---------------------------------------------------------------------------
def _reference(x, weight, bias, patch_size):
    conv = jax.lax.conv_general_dilated(
        x, weight,
        window_strides=(patch_size, patch_size),
        padding="VALID",
        dimension_numbers=("NCHW", "OIHW", "NCHW"),
    ) + bias.reshape(1, -1, 1, 1)
    B, D, Hp, Wp = conv.shape
    return jnp.transpose(conv, (0, 2, 3, 1)).reshape(B, Hp * Wp, D)


def _run_case(name, B, d_model, H, W, p, dtype, atol):
    key = jax.random.PRNGKey(0)
    kx, kw, kb = jax.random.split(key, 3)

    x = jax.random.normal(kx, (B, d_model, H, W), dtype=jnp.float32)
    fan_in = d_model * p * p
    bound = 1.0 / math.sqrt(fan_in)
    weight = jax.random.uniform(kw, (d_model, d_model, p, p),
                                minval=-bound, maxval=bound, dtype=jnp.float32)
    bias = jax.random.uniform(kb, (d_model,),
                              minval=-bound, maxval=bound, dtype=jnp.float32)

    x_c = x.astype(dtype)
    w_c = weight.astype(dtype)

    fwd = jax.jit(functools.partial(tmae_patching_forward, patch_size=p))
    out = jax.block_until_ready(fwd(x_c, w_c, bias))

    Hp, Wp = H // p, W // p
    assert out.shape == (B, Hp * Wp, d_model), (name, out.shape)

    # Reference in f32 on the (possibly rounded) operands.
    ref = _reference(x_c.astype(jnp.float32), w_c.astype(jnp.float32), bias, p)
    err = float(jnp.max(jnp.abs(out.astype(jnp.float32) - ref)))
    assert err <= atol, f"{name}: max abs err {err} > {atol}"


if __name__ == "__main__":
    # 1) f32, single-K-tile fast path (K = 32*4*4 = 512).
    _run_case("f32_nk1", B=2, d_model=32, H=16, W=16, p=4,
              dtype=jnp.float32, atol=1e-4)
    # 2) f32, multi-K-tile resident-output accumulation path (K = 32*8*8 = 2048).
    _run_case("f32_nk2", B=2, d_model=32, H=16, W=16, p=8,
              dtype=jnp.float32, atol=1e-4)
    # 3) bf16 operands (narrow output -> scratch accumulator path), f32 accum.
    _run_case("bf16_nk2", B=2, d_model=32, H=16, W=16, p=8,
              dtype=jnp.bfloat16, atol=3e-2)

    print("KERNEL_OK")
</pallas_src>

<mosaic_0001>
module attributes {stable_mosaic.version = 11 : i64} {
  func.func @_gemm_bias_kernel_single(%arg0: i32, %arg1: memref<32x512xf32, #tpu.memory_space<vmem>>, %arg2: memref<512x128xf32, #tpu.memory_space<vmem>>, %arg3: memref<1x128xf32, #tpu.memory_space<vmem>>, %arg4: memref<32x128xf32, #tpu.memory_space<vmem>>) attributes {dimension_semantics = [#tpu.dimension_semantics<parallel>], iteration_bounds = array<i64: 1>, scalar_prefetch = 0 : i64, scratch_operands = 0 : i64, tpu.core_type = #tpu.core_type<tc>, window_params = [{transform_indices = @transform_0, window_bounds = array<i64: 32, 512>}, {pipeline_mode = #tpu.pipeline_mode<synchronous>, transform_indices = @transform_1, window_bounds = array<i64: 512, 128>}, {pipeline_mode = #tpu.pipeline_mode<synchronous>, transform_indices = @transform_2, window_bounds = array<i64: 1, 128>}, {transform_indices = @transform_3, window_bounds = array<i64: 32, 128>}]} {
    %c0 = arith.constant 0 : index
    %c0_0 = arith.constant 0 : index
    %0 = vector.load %arg1[%c0, %c0_0] : memref<32x512xf32, #tpu.memory_space<vmem>>, vector<32x512xf32>
    %c0_1 = arith.constant 0 : index
    %c0_2 = arith.constant 0 : index
    %1 = vector.load %arg2[%c0_1, %c0_2] : memref<512x128xf32, #tpu.memory_space<vmem>>, vector<512x128xf32>
    %cst = arith.constant dense<0.000000e+00> : vector<32x128xf32>
    %2 = tpu.matmul %0, %1, %cst {dimension_numbers = #tpu.dot_dimension_numbers<[1], [0], [0], [1], [0, 0, 1, 1], [], []>} : vector<32x512xf32>, vector<512x128xf32>, vector<32x128xf32> -> vector<32x128xf32>
    %c0_3 = arith.constant 0 : index
    %c0_4 = arith.constant 0 : index
    %3 = vector.load %arg3[%c0_3, %c0_4] : memref<1x128xf32, #tpu.memory_space<vmem>>, vector<1x128xf32>
    %4 = vector.broadcast %3 : vector<1x128xf32> to vector<32x128xf32>
    %5 = arith.addf %2, %4 : vector<32x128xf32>
    %c0_5 = arith.constant 0 : index
    %c0_6 = arith.constant 0 : index
    %6 = vector.load %arg4[%c0_5, %c0_6] : memref<32x128xf32, #tpu.memory_space<vmem>>, vector<32x128xf32>
    tpu.vector_store %arg4[%c0_5, %c0_6], %5 {strides = array<i32>} : memref<32x128xf32, #tpu.memory_space<vmem>>, vector<32x128xf32>,
    return
  }
  func.func @transform_0(%arg0: i32) -> (i32, i32) {
    %c0_i32 = arith.constant 0 : i32
    %c0_i32_0 = arith.constant 0 : i32
    return %arg0, %c0_i32 : i32, i32
  }
  func.func @transform_1(%arg0: i32) -> (i32, i32) {
    %c0_i32 = arith.constant 0 : i32
    %c0_i32_0 = arith.constant 0 : i32
    %c0_i32_1 = arith.constant 0 : i32
    return %c0_i32, %c0_i32_0 : i32, i32
  }
  func.func @transform_2(%arg0: i32) -> (i32, i32) {
    %c0_i32 = arith.constant 0 : i32
    %c0_i32_0 = arith.constant 0 : i32
    %c0_i32_1 = arith.constant 0 : i32
    return %c0_i32, %c0_i32_0 : i32, i32
  }
  func.func @transform_3(%arg0: i32) -> (i32, i32) {
    %c0_i32 = arith.constant 0 : i32
    %c0_i32_0 = arith.constant 0 : i32
    return %arg0, %c0_i32 : i32, i32
  }
}

</mosaic_0001>

<bundles_post_ra>
// kernel: tmae_patching_forward.1
= control target key start
LH: loop header
LB: loop body
LE: loop exit
PB: predicated region body
PF: predicated region fallthrough
CT: control target
= control target key end

     0   :  { %s750_s0 = inlined_call_operand.vmem [shape: f32[32,512], index: 0, kind: input, shape index: {}]   ;;  %s751_s1 = inlined_call_operand.vmem [shape: f32[512,128], index: 1, kind: input, shape index: {}]   ;;  %s752_s2 = inlined_call_operand.vmem [shape: f32[1,128], index: 2, kind: input, shape index: {}]   ;;  %s753_s3 = inlined_call_operand.hbm [shape: f32[32,128], index: 3, kind: output, shape index: {}]  }
   0x1   :  { %v47_v0 = vld [vmem:[%s751_s1 + $0x80] sm:$0xff]  ;;  %v48_v1 = vld [vmem:[%s751_s1 + $0x88] sm:$0xff]  ;;  %v49_v11 = vld [vmem:[%s751_s1 + $0x90] sm:$0xff] }
   0x2   :  { %v31_v2 = vld [vmem:[%s751_s1] sm:$0xff]  ;;  %v381_v3 = vpack.c.bf16 %v48_v1, %v47_v0  ;;  %v32_v4 = vld [vmem:[%s751_s1 + $0x8] sm:$0xff]  ;;  %v50_v13 = vld [vmem:[%s751_s1 + $0x98] sm:$0xff] }
   0x3   :  { %v79_v5 = vld [vmem:[%s751_s1 + $0x180] sm:$0xff]  ;;  %v80_v6 = vld [vmem:[%s751_s1 + $0x188] sm:$0xff]  ;;  %v383_v7 = vpack.c.bf16 %v32_v4, %v31_v2  ;;  %v33_v14 = vld [vmem:[%s751_s1 + $0x10] sm:$0xff]  ;;  %v385_v16 = vpack.c.bf16 %v50_v13, %v49_v11 }
   0x4   :  { %v413_v8 = vpack.c.bf16 %v80_v6, %v79_v5  ;;  %v63_v9 = vld [vmem:[%s751_s1 + $0x100] sm:$0xff]  ;;  %v64_v10 = vld [vmem:[%s751_s1 + $0x108] sm:$0xff]  ;;  %382 = vmatprep.subr.bf16.mxu0 %v381_v3  ;;  %v34_v15 = vld [vmem:[%s751_s1 + $0x18] sm:$0xff] }
   0x5   :  { %v415_v12 = vpack.c.bf16 %v64_v10, %v63_v9  ;;  %384 = vmatpush3.bf16.msra.mxu0 %v383_v7  ;;  %v387_v17 = vpack.c.bf16 %v34_v15, %v33_v14  ;;  %v81_v18 = vld [vmem:[%s751_s1 + $0x190] sm:$0xff]  ;;  %v82_v19 = vld [vmem:[%s751_s1 + $0x198] sm:$0xff]  ;;  %v51_v23 = vld [vmem:[%s751_s1 + $0xa0] sm:$0xff] }
   0x6   :  { %414 = vmatprep.subr.bf16.mxu1 %v413_v8  ;;  %v65_v20 = vld [vmem:[%s751_s1 + $0x110] sm:$0xff]  ;;  %v417_v21 = vpack.c.bf16 %v82_v19, %v81_v18  ;;  %v66_v22 = vld [vmem:[%s751_s1 + $0x118] sm:$0xff]  ;;  %v52_v24 = vld [vmem:[%s751_s1 + $0xa8] sm:$0xff]  ;;  %386 = vmatprep.subr.bf16.mxu0 %v385_v16 }
   0x7   :  { %416 = vmatpush3.bf16.msra.mxu1 %v415_v12  ;;  %v419_v25 = vpack.c.bf16 %v66_v22, %v65_v20  ;;  %v389_v26 = vpack.c.bf16 %v52_v24, %v51_v23  ;;  %v35_v27 = vld [vmem:[%s751_s1 + $0x20] sm:$0xff]  ;;  %v36_v28 = vld [vmem:[%s751_s1 + $0x28] sm:$0xff]  ;;  %v53_v35 = vld [vmem:[%s751_s1 + $0xb0] sm:$0xff] }
   0x8   :  { %v83_v29 = vld [vmem:[%s751_s1 + $0x1a0] sm:$0xff]  ;;  %418 = vmatprep.subr.bf16.mxu1 %v417_v21  ;;  %v84_v30 = vld [vmem:[%s751_s1 + $0x1a8] sm:$0xff]  ;;  %v391_v33 = vpack.c.bf16 %v36_v28, %v35_v27  ;;  %v54_v36 = vld [vmem:[%s751_s1 + $0xb8] sm:$0xff] }
   0x9   :  { %v67_v31 = vld [vmem:[%s751_s1 + $0x120] sm:$0xff]  ;;  %v68_v32 = vld [vmem:[%s751_s1 + $0x128] sm:$0xff]  ;;  %388 = vmatpush3.bf16.msra.mxu0 %v387_v17  ;;  %v421_v34 = vpack.c.bf16 %v84_v30, %v83_v29  ;;  %v37_v37 = vld [vmem:[%s751_s1 + $0x30] sm:$0xff]  ;;  %v393_v39 = vpack.c.bf16 %v54_v36, %v53_v35 }
   0xa   :  { %390 = vmatprep.subr.bf16.mxu0 %v389_v26  ;;  %v423_v38 = vpack.c.bf16 %v68_v32, %v67_v31  ;;  %v38_v40 = vld [vmem:[%s751_s1 + $0x38] sm:$0xff]  ;;  %v85_v41 = vld [vmem:[%s751_s1 + $0x1b0] sm:$0xff]  ;;  %v55_v46 = vld [vmem:[%s751_s1 + $0xc0] sm:$0xff] }
   0xb   :  { %420 = vmatpush3.bf16.msra.mxu1 %v419_v25  ;;  %v86_v42 = vld [vmem:[%s751_s1 + $0x1b8] sm:$0xff]  ;;  %v69_v44 = vld [vmem:[%s751_s1 + $0x130] sm:$0xff]  ;;  %v56_v47 = vld [vmem:[%s751_s1 + $0xc8] sm:$0xff]  ;;  %v395_v48 = vpack.c.bf16 %v38_v40, %v37_v37 }
   0xc   :  { %422 = vmatprep.subr.bf16.mxu1 %v421_v34  ;;  %v425_v43 = vpack.c.bf16 %v86_v42, %v85_v41  ;;  %v70_v45 = vld [vmem:[%s751_s1 + $0x138] sm:$0xff]  ;;  %v87_v49 = vld [vmem:[%s751_s1 + $0x1c0] sm:$0xff]  ;;  %v88_v50 = vld [vmem:[%s751_s1 + $0x1c8] sm:$0xff]  ;;  %v397_v52 = vpack.c.bf16 %v56_v47, %v55_v46 }
   0xd   :  { %392 = vmatpush3.bf16.msra.mxu0 %v391_v33  ;;  %v427_v51 = vpack.c.bf16 %v70_v45, %v69_v44  ;;  %v39_v53 = vld [vmem:[%s751_s1 + $0x40] sm:$0xff]  ;;  %v40_v54 = vld [vmem:[%s751_s1 + $0x48] sm:$0xff]  ;;  %v429_v56 = vpack.c.bf16 %v88_v50, %v87_v49  ;;  %v57_v58 = vld [vmem:[%s751_s1 + $0xd0] sm:$0xff] }
   0xe   :  { %394 = vmatprep.subr.bf16.mxu0 %v393_v39  ;;  %v71_v55 = vld [vmem:[%s751_s1 + $0x140] sm:$0xff]  ;;  %v72_v57 = vld [vmem:[%s751_s1 + $0x148] sm:$0xff]  ;;  %v58_v59 = vld [vmem:[%s751_s1 + $0xd8] sm:$0xff]  ;;  %v399_v62 = vpack.c.bf16 %v40_v54, %v39_v53 }
   0xf   :  { %424 = vmatpush3.bf16.msra.mxu1 %v423_v38  ;;  %v89_v60 = vld [vmem:[%s751_s1 + $0x1d0] sm:$0xff]  ;;  %v90_v61 = vld [vmem:[%s751_s1 + $0x1d8] sm:$0xff]  ;;  %v431_v63 = vpack.c.bf16 %v72_v57, %v71_v55  ;;  %v401_v0 = vpack.c.bf16 %v58_v59, %v57_v58  ;;  %v59_v6 = vld [vmem:[%s751_s1 + $0xe0] sm:$0xff] }
  0x10   :  { %426 = vmatprep.subr.bf16.mxu1 %v425_v43  ;;  %v41_v1 = vld [vmem:[%s751_s1 + $0x50] sm:$0xff]  ;;  %v42_v2 = vld [vmem:[%s751_s1 + $0x58] sm:$0xff]  ;;  %v433_v4 = vpack.c.bf16 %v90_v61, %v89_v60  ;;  %v60_v7 = vld [vmem:[%s751_s1 + $0xe8] sm:$0xff] }
  0x11   :  { %396 = vmatpush3.bf16.msra.mxu0 %v395_v48  ;;  %v73_v3 = vld [vmem:[%s751_s1 + $0x150] sm:$0xff]  ;;  %v74_v5 = vld [vmem:[%s751_s1 + $0x158] sm:$0xff]  ;;  %v91_v8 = vld [vmem:[%s751_s1 + $0x1e0] sm:$0xff]  ;;  %v403_v10 = vpack.c.bf16 %v42_v2, %v41_v1  ;;  %v405_v14 = vpack.c.bf16 %v60_v7, %v59_v6 }
  0x12   :  { %398 = vmatprep.subr.bf16.mxu0 %v397_v52  ;;  %v92_v9 = vld [vmem:[%s751_s1 + $0x1e8] sm:$0xff]  ;;  %v43_v11 = vld [vmem:[%s751_s1 + $0x60] sm:$0xff]  ;;  %v435_v13 = vpack.c.bf16 %v74_v5, %v73_v3  ;;  %v61_v19 = vld [vmem:[%s751_s1 + $0xf0] sm:$0xff] }
  0x13   :  { %428 = vmatpush3.bf16.msra.mxu1 %v427_v51  ;;  %v44_v12 = vld [vmem:[%s751_s1 + $0x68] sm:$0xff]  ;;  %v75_v15 = vld [vmem:[%s751_s1 + $0x160] sm:$0xff]  ;;  %v437_v18 = vpack.c.bf16 %v92_v9, %v91_v8  ;;  %v62_v20 = vld [vmem:[%s751_s1 + $0xf8] sm:$0xff] }
  0x14   :  { %430 = vmatprep.subr.bf16.mxu1 %v429_v56  ;;  %v76_v16 = vld [vmem:[%s751_s1 + $0x168] sm:$0xff]  ;;  %v18_v21 = vld [vmem:[%s750_s0 + $0x18] sm:$0xff]  ;;  %v93_v22 = vld [vmem:[%s751_s1 + $0x1f0] sm:$0xff]  ;;  %v407_v24 = vpack.c.bf16 %v44_v12, %v43_v11  ;;  %v409_v26 = vpack.c.bf16 %v62_v20, %v61_v19 }
  0x15   :  { %400 = vmatpush3.bf16.msra.mxu0 %v399_v62  ;;  %v16_v17 = vld [vmem:[%s750_s0 + $0x8] sm:$0xff]  ;;  %v94_v23 = vld [vmem:[%s751_s1 + $0x1f8] sm:$0xff]  ;;  %251 = vmatprep.mubr.f32.mxu1 %v18_v21  ;;  %v439_v25 = vpack.c.bf16 %v76_v16, %v75_v15  ;;  %v45_v27 = vld [vmem:[%s751_s1 + $0x70] sm:$0xff] }
  0x16   :  { %402 = vmatprep.subr.bf16.mxu0 %v401_v0  ;;  %166 = vmatprep.mubr.f32.mxu0 %v16_v17  ;;  %v46_v28 = vld [vmem:[%s751_s1 + $0x78] sm:$0xff]  ;;  %v441_v29 = vpack.c.bf16 %v94_v23, %v93_v22  ;;  %v77_v30 = vld [vmem:[%s751_s1 + $0x170] sm:$0xff] }
  0x17   :  { %432 = vmatpush3.bf16.msra.mxu1 %v431_v63  ;;  %v78_v31 = vld [vmem:[%s751_s1 + $0x178] sm:$0xff] }
  0x18   :  { %434 = vmatprep.subr.bf16.mxu1 %v433_v4 }
  0x19   :  { %404 = vmatpush3.bf16.msra.mxu0 %v403_v10 }
  0x1a   :  { %406 = vmatprep.subr.bf16.mxu0 %v405_v14 }
  0x1b   :  { %436 = vmatpush3.bf16.msra.mxu1 %v435_v13 }
  0x1c   :  { %438 = vmatprep.subr.bf16.mxu1 %v437_v18 }
  0x1d   :  { %8 = vsyncpa [#allocation3], 0  ;;  %408 = vmatpush3.bf16.msra.mxu0 %v407_v24  ;;  %v411_v32 = vpack.c.bf16 %v46_v28, %v45_v27  ;;  %v443_v33 = vpack.c.bf16 %v78_v31, %v77_v30  ;;  %v15_v34 = vld [vmem:[%s750_s0] sm:$0xff]  ;;  %v17_v35 = vld [vmem:[%s750_s0 + $0x10] sm:$0xff] }
  0x1e   :  { %410 = vmatprep.subr.bf16.mxu0 %v409_v26  ;;  %v20_v36 = vld [vmem:[%s750_s0 + $0x28] sm:$0xff]  ;;  %v22_v37 = vld [vmem:[%s750_s0 + $0x38] sm:$0xff]  ;;  %v19_v38 = vld [vmem:[%s750_s0 + $0x20] sm:$0xff] }
  0x1f   :  { %440 = vmatpush3.bf16.msra.mxu1 %v439_v25  ;;  %v21_v39 = vld [vmem:[%s750_s0 + $0x30] sm:$0xff]  ;;  %v24_v40 = vld [vmem:[%s750_s0 + $0x48] sm:$0xff]  ;;  %v26_v41 = vld [vmem:[%s750_s0 + $0x58] sm:$0xff] }
  0x20   :  { %442 = vmatprep.subr.bf16.mxu1 %v441_v29  ;;  %v23_v42 = vld [vmem:[%s750_s0 + $0x40] sm:$0xff]  ;;  %v25_v43 = vld [vmem:[%s750_s0 + $0x50] sm:$0xff]  ;;  %v28_v44 = vld [vmem:[%s750_s0 + $0x68] sm:$0xff] }
  0x21   :  { %412 = vmatpush3.bf16.msra.mxu0 %v411_v32  ;;  %v30_v45 = vld [vmem:[%s750_s0 + $0x78] sm:$0xff]  ;;  %v27_v46 = vld [vmem:[%s750_s0 + $0x60] sm:$0xff]  ;;  %v29_v47 = vld [vmem:[%s750_s0 + $0x70] sm:$0xff]  ;;  %s472_s0 = smov [#allocation2]  }
  0x22   :  { %v292_v49 = vld [vmem:[%s752_s2] ss:$0 sm:$0xff]  ;;  %s281_s2 = sshll.u32 %s472_s0, 4  ;;  %s282_s2 = int_to_ptr.vmem [resolvable:$true] %s281_s2 }
  0x23   :  { %444 = vmatpush3.bf16.msra.mxu1 %v443_v33  ;;  %s448_s11 = scalar_lea.vmem %s282_s2, 512  ;;  %p453_p1 = scmp.lt.s32.totalorder %s282_s2, %s282_s2 }
  0x24   :  { %167 = vmatmul.mubr.f32.vlgmr.msra.gmra.mrb[0].mxu0 %v15_v34  ;;  %p449_p0 = scmp.ne.s32.totalorder %s282_s2, %s448_s11  ;;  %p454_p2 = scmp.lt.s32.totalorder %s448_s11, %s448_s11 }
  0x25   :  { %171 = vmatprep.mubr.f32.mxu0 %v20_v36 }
  0x26   :  { %252 = vmatmul.mubr.f32.vlgmr.msra.gmra.mrb[0].mxu1 %v17_v35  ;;  %p455_p3 = por %p454_p2, %p453_p1 }
  0x27   :  { %256 = vmatprep.mubr.f32.mxu1 %v22_v37 }
  0x28   :  { %172 = vmatmul.mubr.f32.gmra.mrb[2].mxu0 %v19_v38  ;;  %p456_p4 = pnand %p455_p3, %p449_p0 }
  0x29   :  { %176 = vmatprep.mubr.f32.mxu0 %v24_v40 }
  0x2a   :  { %257 = vmatmul.mubr.f32.gmra.mrb[2].mxu1 %v21_v39 }
  0x2b   :  { %261 = vmatprep.mubr.f32.mxu1 %v26_v41 }
  0x2c   :  { %177 = vmatmul.mubr.f32.gmra.mrb[4].mxu0 %v23_v42 }
  0x2d   :  { %181 = vmatprep.mubr.f32.mxu0 %v28_v44 }
  0x2e   :  { %262 = vmatmul.mubr.f32.gmra.mrb[4].mxu1 %v25_v43 }
  0x2f   :  { %266 = vmatprep.mubr.f32.mxu1 %v30_v45 }
  0x30   :  { %182 = vmatmul.mubr.f32.gmra.mrb[6].mxu0 %v27_v46 }
  0x32   :  { %267 = vmatmul.mubr.f32.gmra.mrb[6].mxu1 %v29_v47 }
  0xf7   :  { %v325_v48 = vpop.f32.mrb[0].mxu0 }
  0xf8   :  { %v326_v50 = vpop.f32.mrb[1].mxu0 }
  0xf9   :  { %v369_v51 = vpop.f32.mrb[0].mxu1  ;;  %v327_v52 = vadd.f32 %v326_v50, %v325_v48 }
  0xfa   :  { %v370_v53 = vpop.f32.mrb[1].mxu1 }
  0xfb   :  { %v371_v54 = vadd.f32 %v370_v53, %v369_v51  ;;  %v169_v55 = vadd.f32 %v327_v52, %v292_v49  ;;  %v328_v56 = vpop.f32.mrb[2].mxu0 }
  0xfc   :  { %v329_v57 = vpop.f32.mrb[3].mxu0 }
  0xfd   :  { %v372_v58 = vpop.f32.mrb[2].mxu1  ;;  %v254_v59 = vadd.f32 %v371_v54, %v169_v55  ;;  %v330_v60 = vadd.f32 %v329_v57, %v328_v56 }
  0xfe   :  { %v373_v61 = vpop.f32.mrb[3].mxu1 }
  0xff   :  { %v374_v62 = vadd.f32 %v373_v61, %v372_v58  ;;  %272 = vst [vmem:[#allocation2] sm:$0xff] %v254_v59  ;;  %v174_v63 = vadd.f32 %v330_v60, %v292_v49  ;;  %v331_v0 = vpop.f32.mrb[4].mxu0 }
 0x100   :  { %v332_v1 = vpop.f32.mrb[5].mxu0 }
 0x101   :  { %v375_v2 = vpop.f32.mrb[4].mxu1  ;;  %v259_v3 = vadd.f32 %v374_v62, %v174_v63  ;;  %v333_v4 = vadd.f32 %v332_v1, %v331_v0 }
 0x102   :  { %v376_v5 = vpop.f32.mrb[5].mxu1 }
 0x103   :  { %v377_v6 = vadd.f32 %v376_v5, %v375_v2  ;;  %273 = vst [vmem:[#allocation2 + $0x8] sm:$0xff] %v259_v3  ;;  %v179_v7 = vadd.f32 %v333_v4, %v292_v49  ;;  %v334_v8 = vpop.f32.mrb[6].mxu0 }
 0x104   :  { %v335_v9 = vpop.f32.mrb[7].mxu0 }
 0x105   :  { %v378_v10 = vpop.f32.mrb[6].mxu1  ;;  %v264_v11 = vadd.f32 %v377_v6, %v179_v7  ;;  %v336_v12 = vadd.f32 %v335_v9, %v334_v8 }
 0x106   :  { %v379_v13 = vpop.f32.mrb[7].mxu1 }
 0x107   :  { %v380_v14 = vadd.f32 %v379_v13, %v378_v10  ;;  %274 = vst [vmem:[#allocation2 + $0x10] sm:$0xff] %v264_v11  ;;  %v184_v15 = vadd.f32 %v336_v12, %v292_v49 }
 0x109   :  { %v269_v16 = vadd.f32 %v380_v14, %v184_v15 }
 0x10b   :  { %275 = vst [vmem:[#allocation2 + $0x18] sm:$0xff] %v269_v16 }
 0x10c   :  { %459 = shalt.err (!%p456_p4)
}
 0x10d   :  { %s460_s14 = scalar_lea.hbm %s753_s3, 512 }
 0x10e   :  { %p461_p5 = scmp.ne.s32.totalorder %s753_s3, %s460_s14  ;;  %p464_p6 = scmp.lt.u32.totalorder %s460_s14, %s753_s3 }
 0x110   :  { %p466_p7 = pnand %p464_p6, %p461_p5 }
 0x112   :  { %469 = shalt.err (!%p466_p7)
}
 0x113   :  { %s473_s18 = smov 128   ;;  %s474_s19 = smov 8  }
 0x114   :  { %287 = dma.vmem_to_hbm [thread:$0]  %s282_s2, 512, %s753_s3, [#allocation3], %s473_s18, %s473_s18, %s474_s19  }
 0x115   :  { %470 = dma.done.wait [#allocation3], 512  }
 0x116   :  { %471 = vsyncadd [#allocation3], 4294966784 }
 0x117   :  { %291 = vsyncpa [#allocation3], 1 }

</bundles_post_ra>
